<compile_context>
chip_gen: v7x
topology: tpu7x:2x2x1
jax: 0.10.0
libtpu: 0.0.40
codegen_flags: <defaults>
</compile_context>

<pallas_src>
import functools
import math

import jax
import jax.numpy as jnp
from jax.experimental import pallas as pl
from jax.experimental.pallas import tpu as pltpu


# ---------------------------------------------------------------------------
# Generation-aware VMEM budget
# ---------------------------------------------------------------------------

def _query_vmem_capacity_bytes():
    try:
        info = pltpu.get_tpu_info()
        cap = getattr(info, "vmem_capacity_bytes", None)
        if cap:
            return int(cap)
    except Exception:
        pass
    # Conservative fallback = v7x per-TensorCore VMEM (smallest current gen).
    return 64 * 1024 * 1024


_VMEM_CAPACITY_BYTES = _query_vmem_capacity_bytes()
# ~30% headroom for compiler temporaries / pipelining slack.
_FUSED_VMEM_BUDGET_BYTES = int(_VMEM_CAPACITY_BYTES * 0.70)
_VMEM_LIMIT_BYTES = max(32 * 1024 * 1024,
                        min(int(_VMEM_CAPACITY_BYTES * 0.85), 128 * 1024 * 1024))


# ---------------------------------------------------------------------------
# Small helpers
# ---------------------------------------------------------------------------

def _round_up(x, m):
    return ((x + m - 1) // m) * m


def _pad_2d(x, rows, cols, dtype):
    """Zero-pad / cast a 2-D array.  No-op (no extra HBM copy) when already
    the right shape and dtype."""
    r, c = x.shape
    dtype = jnp.dtype(dtype)
    if x.dtype != dtype:
        x = x.astype(dtype)
    if r == rows and c == cols:
        return x
    return jnp.zeros((rows, cols), dtype).at[:r, :c].set(x)


def _pick_batch_tile(batch):
    """Batch block size: single block for small batches, 128/256-row blocks
    for large ones (>=2 blocks keeps both v7x TensorCores busy and pipelines
    the x/out DMAs)."""
    b8 = _round_up(max(batch, 8), 8)
    if b8 >= 512:
        return 256
    if b8 > 128:
        return 128
    return b8


def _pick_tile(dim_pad, candidates=(512, 256, 128)):
    """Largest MXU-friendly tile that divides the 128-padded dim (avoids
    re-padding the prepared weights per call)."""
    for t in candidates:
        if dim_pad % t == 0:
            return t
    return 128


# ---------------------------------------------------------------------------
# Fused whole-MLP kernel (weights resident in VMEM, batch-blocked grid)
# ---------------------------------------------------------------------------

def _make_fused_mlp_kernel(num_layers, act_dtype):
    act_dtype = jnp.dtype(act_dtype)

    def kernel(*refs):
        # refs = (x, w0, b0, w1, b1, ..., out)
        x_ref = refs[0]
        o_ref = refs[-1]
        h = x_ref[...]
        for l in range(num_layers):
            w = refs[1 + 2 * l][...]
            b = refs[2 + 2 * l][...]            # (1, N_pad): sublane-broadcast add
            y = jnp.dot(h, w, preferred_element_type=jnp.float32) + b
            h = jnp.maximum(y, 0.0)
            if l + 1 < num_layers:
                h = h.astype(act_dtype)         # feed MXU at matmul dtype (no-op f32)
        o_ref[...] = h.astype(o_ref.dtype)

    return kernel


def _mlp_forward_fused(x_p, weights, biases, *, bm, mm_dtype):
    B_pad, K_pad = x_p.shape
    last_pad = weights[-1].shape[1]
    num_layers = len(weights)

    in_specs = [pl.BlockSpec((bm, K_pad), lambda i: (i, 0))]
    flat_inputs = [x_p]
    flops = 0
    bytes_accessed = x_p.size * x_p.dtype.itemsize + B_pad * last_pad * 4
    for w_p, b_p in zip(weights, biases):
        kp, npd = w_p.shape
        # Constant block index => fetched once, VMEM-resident across batch blocks.
        in_specs.append(pl.BlockSpec((kp, npd), lambda i: (0, 0)))
        in_specs.append(pl.BlockSpec((1, npd), lambda i: (0, 0)))
        flat_inputs += [w_p, b_p]
        flops += 2 * B_pad * kp * npd
        bytes_accessed += w_p.size * w_p.dtype.itemsize + b_p.size * 4

    kernel = _make_fused_mlp_kernel(num_layers, mm_dtype)

    return pl.pallas_call(
        kernel,
        out_shape=jax.ShapeDtypeStruct((B_pad, last_pad), jnp.float32),
        grid_spec=pltpu.PrefetchScalarGridSpec(
            num_scalar_prefetch=0,
            grid=(B_pad // bm,),
            in_specs=in_specs,
            out_specs=pl.BlockSpec((bm, last_pad), lambda i: (i, 0)),
        ),
        compiler_params=pltpu.CompilerParams(
            dimension_semantics=("parallel",),      # batch blocks -> 2 TCs on v7x
            vmem_limit_bytes=_VMEM_LIMIT_BYTES,
        ),
        cost_estimate=pl.CostEstimate(flops=flops, transcendentals=0,
                                      bytes_accessed=bytes_accessed),
    )(*flat_inputs)


def _fused_vmem_bytes(bm, k_pad0, weights, biases, mm_itemsize, last_pad):
    """Conservative VMEM footprint estimate for the fused path."""
    total = 2 * bm * k_pad0 * mm_itemsize                  # x block (double-buffered)
    widest = max(k_pad0, last_pad)
    for w_p, b_p in zip(weights, biases):
        kp, npd = w_p.shape
        total += 2 * kp * npd * mm_itemsize                # weights (x2: conservative)
        total += 2 * npd * 4                               # bias
        widest = max(widest, npd)
    total += 2 * bm * last_pad * 4                         # output block (double-buf)
    total += 4 * bm * widest * 4                           # intermediates / temporaries
    return total


# ---------------------------------------------------------------------------
# Tiled / pipelined single-layer kernel (fallback for models that don't fit)
# ---------------------------------------------------------------------------

def _tiled_linear_relu_kernel(x_ref, w_ref, b_ref, o_ref, acc_ref):
    @pl.when(pl.program_id(2) == 0)
    def _():
        # Fold the bias into the accumulator init (saves a (tm,tn) add in the
        # epilogue; the init pass touches the whole accumulator anyway).
        acc_ref[...] = jnp.broadcast_to(b_ref[...], acc_ref.shape).astype(jnp.float32)

    acc_ref[...] += jnp.dot(x_ref[...], w_ref[...],
                            preferred_element_type=jnp.float32)

    @pl.when(pl.program_id(2) == pl.num_programs(2) - 1)
    def _():
        o_ref[...] = jnp.maximum(acc_ref[...], 0.0).astype(o_ref.dtype)


def _linear_relu_tiled_padded(x_p, w_p, b_p, *, tm, out_dtype, vmem_limit_bytes):
    """relu(x_p @ w_p + b_p) on already (8,128)-padded operands."""
    M_pad, K_pad = x_p.shape
    K_pad2, N_pad = w_p.shape
    assert K_pad == K_pad2
    out_dtype = jnp.dtype(out_dtype)

    tn = _pick_tile(N_pad)
    tk = _pick_tile(K_pad)
    grid = (M_pad // tm, N_pad // tn, K_pad // tk)

    flops = 2 * M_pad * K_pad * N_pad
    bytes_accessed = (x_p.size * x_p.dtype.itemsize + w_p.size * w_p.dtype.itemsize
                      + b_p.size * 4 + M_pad * N_pad * out_dtype.itemsize)

    return pl.pallas_call(
        _tiled_linear_relu_kernel,
        out_shape=jax.ShapeDtypeStruct((M_pad, N_pad), out_dtype),
        grid_spec=pltpu.PrefetchScalarGridSpec(
            num_scalar_prefetch=0,
            grid=grid,
            in_specs=[
                pl.BlockSpec((tm, tk), lambda i, j, k: (i, k)),
                pl.BlockSpec((tk, tn), lambda i, j, k: (k, j)),
                pl.BlockSpec((1, tn), lambda i, j, k: (0, j)),
            ],
            out_specs=pl.BlockSpec((tm, tn), lambda i, j, k: (i, j)),
            scratch_shapes=[pltpu.VMEM((tm, tn), jnp.float32)],
        ),
        compiler_params=pltpu.CompilerParams(
            dimension_semantics=("parallel", "parallel", "arbitrary"),
            vmem_limit_bytes=vmem_limit_bytes,
        ),
        cost_estimate=pl.CostEstimate(flops=flops, transcendentals=0,
                                      bytes_accessed=bytes_accessed),
    )(x_p, w_p, b_p)


def linear_relu_tiled(x, w, b, *, matmul_dtype=jnp.float32):
    """Standalone y = relu(x @ w + b) with an (M,N,K)-tiled pipeline."""
    B, K = x.shape
    K2, N = w.shape
    assert K == K2
    mm = jnp.dtype(matmul_dtype)

    tm = _pick_batch_tile(B)
    M_pad = _round_up(max(B, 8), tm)
    K_pad = _round_up(K, 128)
    N_pad = _round_up(N, 128)

    x_p = _pad_2d(x, M_pad, K_pad, mm)
    w_p = _pad_2d(w, K_pad, N_pad, mm)
    b_p = _pad_2d(jnp.reshape(b, (1, N)), 1, N_pad, jnp.float32)

    out = _linear_relu_tiled_padded(x_p, w_p, b_p, tm=tm, out_dtype=jnp.float32,
                                    vmem_limit_bytes=_VMEM_LIMIT_BYTES)
    return out[:B, :N]


# ---------------------------------------------------------------------------
# Parameter init (matches PyTorch: kaiming_uniform_(relu), zeros_ bias)
# ---------------------------------------------------------------------------

def init_mlp_params(key, input_dim, layer_dims):
    params = []
    prev_dim = input_dim
    for dim in layer_dims:
        key, wkey = jax.random.split(key)
        gain = math.sqrt(2.0)                      # relu gain
        bound = gain * math.sqrt(3.0 / prev_dim)   # kaiming uniform bound
        # Stored as (in, out); PyTorch stores (out, in) — this is its transpose.
        w = jax.random.uniform(wkey, (prev_dim, dim), dtype=jnp.float32,
                               minval=-bound, maxval=bound)
        b = jnp.zeros((dim,), dtype=jnp.float32)
        params.append((w, b))
        prev_dim = dim
    return params


# ---------------------------------------------------------------------------
# Forward pass (== MLP.forward)
# ---------------------------------------------------------------------------

def prepare_mlp_params(params, matmul_dtype=jnp.float32):
    """Pad (multiples of 128) and cast parameters ONCE, hoisted out of the
    per-forward path."""
    mm = jnp.dtype(matmul_dtype)
    weights, biases = [], []
    for w, b in params:
        k, n = w.shape
        k_pad, n_pad = _round_up(k, 128), _round_up(n, 128)
        weights.append(_pad_2d(jnp.asarray(w), k_pad, n_pad, mm))
        biases.append(_pad_2d(jnp.reshape(jnp.asarray(b), (1, n)), 1, n_pad,
                              jnp.float32))
    out_dim = params[-1][0].shape[1]
    return weights, biases, out_dim


def _mlp_forward_impl(x, weights, biases, *, out_dim, mm_dtype):
    B = x.shape[0]
    K_pad0 = weights[0].shape[0]
    last_pad = weights[-1].shape[1]

    bm = _pick_batch_tile(B)
    B_pad = _round_up(max(B, 8), bm)

    mm_itemsize = jnp.dtype(mm_dtype).itemsize
    fused_bytes = _fused_vmem_bytes(bm, K_pad0, weights, biases,
                                    mm_itemsize, last_pad)

    if fused_bytes <= _FUSED_VMEM_BUDGET_BYTES:
        x_p = _pad_2d(x, B_pad, K_pad0, mm_dtype)
        out_pad = _mlp_forward_fused(x_p, weights, biases, bm=bm,
                                     mm_dtype=mm_dtype)
        # NOTE: padded batch rows hold relu(bias); sliced off here.
        return out_pad[:B, :out_dim]

    # Too big for one VMEM-resident kernel: per-layer tiled matmuls; padded
    # activations (bf16 when requested) flow between layers, final cast to f32.
    h = _pad_2d(x, B_pad, K_pad0, mm_dtype)
    n_layers = len(weights)
    for l, (w_p, b_p) in enumerate(zip(weights, biases)):
        out_dt = jnp.float32 if l == n_layers - 1 else mm_dtype
        h = _linear_relu_tiled_padded(h, w_p, b_p, tm=bm, out_dtype=out_dt,
                                      vmem_limit_bytes=_VMEM_LIMIT_BYTES)
    return h[:B, :out_dim]


def make_mlp_forward(params, *, matmul_dtype=jnp.float32):
    """Prepare (pad/cast) the parameters once and return a jit-compiled
    `forward(x)` matching the PyTorch MLP.forward semantics."""
    mm = jnp.dtype(matmul_dtype)
    weights, biases, out_dim = prepare_mlp_params(params, mm)

    @jax.jit
    def _fwd(x, weights, biases):
        return _mlp_forward_impl(x, weights, biases, out_dim=out_dim, mm_dtype=mm)

    return functools.partial(_fwd, weights=weights, biases=biases)


def mlp_reference(x, params):
    """Pure-JAX reference (full precision) for correctness checks."""
    h = x
    for w, b in params:
        h = jnp.maximum(
            jnp.dot(h, w, precision=jax.lax.Precision.HIGHEST) + b.reshape(1, -1),
            0.0)
    return h


# ---------------------------------------------------------------------------

if __name__ == "__main__":
    key = jax.random.PRNGKey(0)
    key, xkey = jax.random.split(key)

    batch = 2
    input_dim = 32
    layer_dims = [64, 32]     # default layer_dims of the PyTorch module

    x = jax.random.normal(xkey, (batch, input_dim), dtype=jnp.float32)
    params = init_mlp_params(key, input_dim, layer_dims)
    ref = mlp_reference(x, params)

    # Fused f32 path (module semantics; MXU default precision, not bit-exact
    # vs fp32 GEMM — pass a HIGHEST-precision dot if tighter fidelity needed).
    forward = make_mlp_forward(params, matmul_dtype=jnp.float32)
    out = jax.block_until_ready(forward(x))
    assert out.shape == (batch, layer_dims[-1])
    assert out.dtype == jnp.float32
    assert bool(jnp.all(out >= 0.0))                        # ReLU output
    assert bool(jnp.allclose(out, ref, rtol=2e-2, atol=2e-2))

    # bf16-MXU-input fast path (wrapper-side cast, f32 accumulation).
    forward_bf16 = make_mlp_forward(params, matmul_dtype=jnp.bfloat16)
    out_bf16 = jax.block_until_ready(forward_bf16(x))
    assert out_bf16.shape == (batch, layer_dims[-1])
    assert bool(jnp.allclose(out_bf16, ref, rtol=1e-1, atol=1e-1))

    # Exercise the tiled/pipelined fallback kernel on a small non-aligned shape.
    ka, kb, kc = jax.random.split(jax.random.PRNGKey(1), 3)
    xt = jax.random.normal(ka, (16, 160), dtype=jnp.float32)
    wt = jax.random.normal(kb, (160, 192), dtype=jnp.float32) * 0.1
    bt = jax.random.normal(kc, (192,), dtype=jnp.float32)
    out_t = jax.block_until_ready(jax.jit(linear_relu_tiled)(xt, wt, bt))
    ref_t = jnp.maximum(
        jnp.dot(xt, wt, precision=jax.lax.Precision.HIGHEST) + bt, 0.0)
    assert out_t.shape == (16, 192)
    assert bool(jnp.allclose(out_t, ref_t, rtol=2e-2, atol=2e-2))

    print("KERNEL_OK")
</pallas_src>

<mosaic_0001>
module attributes {stable_mosaic.version = 11 : i64} {
  func.func @kernel(%arg0: i32, %arg1: memref<8x128xf32, #tpu.memory_space<vmem>>, %arg2: memref<128x128xf32, #tpu.memory_space<vmem>>, %arg3: memref<1x128xf32, #tpu.memory_space<vmem>>, %arg4: memref<128x128xf32, #tpu.memory_space<vmem>>, %arg5: memref<1x128xf32, #tpu.memory_space<vmem>>, %arg6: memref<8x128xf32, #tpu.memory_space<vmem>>) attributes {dimension_semantics = [#tpu.dimension_semantics<parallel>], iteration_bounds = array<i64: 1>, scalar_prefetch = 0 : i64, scratch_operands = 0 : i64, tpu.core_type = #tpu.core_type<tc>, window_params = [{transform_indices = @transform_0, window_bounds = array<i64: 8, 128>}, {pipeline_mode = #tpu.pipeline_mode<synchronous>, transform_indices = @transform_1, window_bounds = array<i64: 128, 128>}, {pipeline_mode = #tpu.pipeline_mode<synchronous>, transform_indices = @transform_2, window_bounds = array<i64: 1, 128>}, {pipeline_mode = #tpu.pipeline_mode<synchronous>, transform_indices = @transform_3, window_bounds = array<i64: 128, 128>}, {pipeline_mode = #tpu.pipeline_mode<synchronous>, transform_indices = @transform_4, window_bounds = array<i64: 1, 128>}, {transform_indices = @transform_5, window_bounds = array<i64: 8, 128>}]} {
    %c0 = arith.constant 0 : index
    %c0_0 = arith.constant 0 : index
    %0 = vector.load %arg1[%c0, %c0_0] : memref<8x128xf32, #tpu.memory_space<vmem>>, vector<8x128xf32>
    %c0_1 = arith.constant 0 : index
    %c0_2 = arith.constant 0 : index
    %1 = vector.load %arg2[%c0_1, %c0_2] : memref<128x128xf32, #tpu.memory_space<vmem>>, vector<128x128xf32>
    %c0_3 = arith.constant 0 : index
    %c0_4 = arith.constant 0 : index
    %2 = vector.load %arg3[%c0_3, %c0_4] : memref<1x128xf32, #tpu.memory_space<vmem>>, vector<1x128xf32>
    %cst = arith.constant dense<0.000000e+00> : vector<8x128xf32>
    %3 = tpu.matmul %0, %1, %cst {dimension_numbers = #tpu.dot_dimension_numbers<[1], [0], [0], [1], [0, 0, 1, 1], [], []>} : vector<8x128xf32>, vector<128x128xf32>, vector<8x128xf32> -> vector<8x128xf32>
    %4 = vector.broadcast %2 : vector<1x128xf32> to vector<8x128xf32>
    %5 = arith.addf %3, %4 : vector<8x128xf32>
    %cst_5 = arith.constant 0.000000e+00 : f32
    %6 = vector.broadcast %cst_5 : f32 to vector<8x128xf32>
    %7 = arith.maximumf %5, %6 : vector<8x128xf32>
    %c0_6 = arith.constant 0 : index
    %c0_7 = arith.constant 0 : index
    %8 = vector.load %arg4[%c0_6, %c0_7] : memref<128x128xf32, #tpu.memory_space<vmem>>, vector<128x128xf32>
    %c0_8 = arith.constant 0 : index
    %c0_9 = arith.constant 0 : index
    %9 = vector.load %arg5[%c0_8, %c0_9] : memref<1x128xf32, #tpu.memory_space<vmem>>, vector<1x128xf32>
    %cst_10 = arith.constant dense<0.000000e+00> : vector<8x128xf32>
    %10 = tpu.matmul %7, %8, %cst_10 {dimension_numbers = #tpu.dot_dimension_numbers<[1], [0], [0], [1], [0, 0, 1, 1], [], []>} : vector<8x128xf32>, vector<128x128xf32>, vector<8x128xf32> -> vector<8x128xf32>
    %11 = vector.broadcast %9 : vector<1x128xf32> to vector<8x128xf32>
    %12 = arith.addf %10, %11 : vector<8x128xf32>
    %cst_11 = arith.constant 0.000000e+00 : f32
    %13 = vector.broadcast %cst_11 : f32 to vector<8x128xf32>
    %14 = arith.maximumf %12, %13 : vector<8x128xf32>
    %c0_12 = arith.constant 0 : index
    %c0_13 = arith.constant 0 : index
    %15 = vector.load %arg6[%c0_12, %c0_13] : memref<8x128xf32, #tpu.memory_space<vmem>>, vector<8x128xf32>
    tpu.vector_store %arg6[%c0_12, %c0_13], %14 {strides = array<i32>} : memref<8x128xf32, #tpu.memory_space<vmem>>, vector<8x128xf32>,
    return
  }
  func.func @transform_0(%arg0: i32) -> (i32, i32) {
    %c0_i32 = arith.constant 0 : i32
    %c0_i32_0 = arith.constant 0 : i32
    return %arg0, %c0_i32 : i32, i32
  }
  func.func @transform_1(%arg0: i32) -> (i32, i32) {
    %c0_i32 = arith.constant 0 : i32
    %c0_i32_0 = arith.constant 0 : i32
    %c0_i32_1 = arith.constant 0 : i32
    return %c0_i32, %c0_i32_0 : i32, i32
  }
  func.func @transform_2(%arg0: i32) -> (i32, i32) {
    %c0_i32 = arith.constant 0 : i32
    %c0_i32_0 = arith.constant 0 : i32
    %c0_i32_1 = arith.constant 0 : i32
    return %c0_i32, %c0_i32_0 : i32, i32
  }
  func.func @transform_3(%arg0: i32) -> (i32, i32) {
    %c0_i32 = arith.constant 0 : i32
    %c0_i32_0 = arith.constant 0 : i32
    %c0_i32_1 = arith.constant 0 : i32
    return %c0_i32, %c0_i32_0 : i32, i32
  }
  func.func @transform_4(%arg0: i32) -> (i32, i32) {
    %c0_i32 = arith.constant 0 : i32
    %c0_i32_0 = arith.constant 0 : i32
    %c0_i32_1 = arith.constant 0 : i32
    return %c0_i32, %c0_i32_0 : i32, i32
  }
  func.func @transform_5(%arg0: i32) -> (i32, i32) {
    %c0_i32 = arith.constant 0 : i32
    %c0_i32_0 = arith.constant 0 : i32
    return %arg0, %c0_i32 : i32, i32
  }
}

</mosaic_0001>

<bundles_post_ra>
// kernel: _fwd.1
= control target key start
LH: loop header
LB: loop body
LE: loop exit
PB: predicated region body
PF: predicated region fallthrough
CT: control target
= control target key end

     0   :  { %10 = vsyncpa [#allocation3], 0  ;;  %s542_s0 = inlined_call_operand.vmem [shape: f32[8,128], index: 0, kind: input, shape index: {}]   ;;  %s543_s1 = inlined_call_operand.hbm [shape: f32[128,128], index: 1, kind: input, shape index: {}]   ;;  %s544_s2 = inlined_call_operand.vmem [shape: f32[1,128], index: 2, kind: input, shape index: {}]   ;;  %s545_s3 = inlined_call_operand.hbm [shape: f32[128,128], index: 3, kind: input, shape index: {}]   ;;  %s546_s4 = inlined_call_operand.vmem [shape: f32[1,128], index: 4, kind: input, shape index: {}]   ;;  %s547_s5 = inlined_call_operand.vmem [shape: f32[8,128], index: 5, kind: output, shape index: {}]  }
   0x1   :  { %11 = vsyncpa [#allocation5], 0  ;;  %s453_s18 = smov [#allocation2]   ;;  %s405_s22 = scalar_lea.hbm %s543_s1, 2048 }
   0x2   :  { %s19_s19 = sshll.u32 %s453_s18, 4  ;;  %p406_p0 = scmp.ne.s32.totalorder %s543_s1, %s405_s22  ;;  %s20_s19 = int_to_ptr.vmem [resolvable:$true] %s19_s19 }
   0x3   :  { %p409_p1 = scmp.lt.u32.totalorder %s405_s22, %s543_s1 }
   0x5   :  { %p411_p2 = pnand %p409_p1, %p406_p0 }
   0x7   :  { %414 = shalt.err (!%p411_p2)
}
   0x8   :  { %s415_s27 = scalar_lea.vmem %s20_s19, 2048  ;;  %p420_p4 = scmp.lt.s32.totalorder %s20_s19, %s20_s19 }
   0x9   :  { %p416_p3 = scmp.ne.s32.totalorder %s20_s19, %s415_s27  ;;  %p421_p5 = scmp.lt.s32.totalorder %s415_s27, %s415_s27 }
   0xb   :  { %p422_p6 = por %p421_p5, %p420_p4 }
   0xd   :  { %p423_p7 = pnand %p422_p6, %p416_p3 }
   0xf   :  { %426 = shalt.err (!%p423_p7)
}
  0x10   :  { %s454_s28 = smov 128   ;;  %s455_s29 = smov 8  }
  0x11   :  { %25 = dma.hbm_to_vmem [thread:$0]  %s543_s1, 2048, %s20_s19, [#allocation3], %s454_s28, %s454_s28, %s455_s29  }
  0x12   :  { %s456_s7 = smov [#allocation4]   ;;  %s427_s11 = scalar_lea.hbm %s545_s3, 2048 }
  0x13   :  { %s33_s8 = sshll.u32 %s456_s7, 4  ;;  %p428_p8 = scmp.ne.s32.totalorder %s545_s3, %s427_s11  ;;  %s34_s8 = int_to_ptr.vmem [resolvable:$true] %s33_s8 }
  0x14   :  { %p431_p9 = scmp.lt.u32.totalorder %s427_s11, %s545_s3 }
  0x16   :  { %p433_p10 = pnand %p431_p9, %p428_p8 }
  0x18   :  { %436 = shalt.err (!%p433_p10)
}
  0x19   :  { %s437_s16 = scalar_lea.vmem %s34_s8, 2048  ;;  %p442_p12 = scmp.lt.s32.totalorder %s34_s8, %s34_s8 }
  0x1a   :  { %p438_p11 = scmp.ne.s32.totalorder %s34_s8, %s437_s16  ;;  %p443_p13 = scmp.lt.s32.totalorder %s437_s16, %s437_s16 }
  0x1c   :  { %p444_p0 = por %p443_p13, %p442_p12 }
  0x1e   :  { %p445_p1 = pnand %p444_p0, %p438_p11 }
  0x20   :  { %448 = shalt.err (!%p445_p1)
}
  0x21   :  { %39 = dma.hbm_to_vmem [thread:$0]  %s545_s3, 2048, %s34_s8, [#allocation5], %s454_s28, %s454_s28, %s455_s29  }
  0x22   :  { %449 = dma.done.wait [#allocation3], 2048  }
  0x23   :  { %450 = vsyncadd [#allocation3], 4294965248 }
  0x24   :  { %451 = dma.done.wait [#allocation5], 2048  }
  0x25   :  { %452 = vsyncadd [#allocation5], 4294965248  ;;  %v457_v0 = vmov 0.0|0.0   ;;  %vm458_vm0 = vmmov 0   ;;  %v459_v1 = vmov 0.0   ;;  %v49_v2 = vld [vmem:[#allocation2] sm:$0xff] }
  0x26   :  { %350 = vmatprep.subr.bf16.mxu0 %v457_v0  ;;  %312 = vmatprep.mubr.msk.f32.mxu0 %vm458_vm0, %v459_v1  ;;  %v50_v3 = vld [vmem:[#allocation2 + $0x8] sm:$0xff]  ;;  %v51_v4 = vld [vmem:[#allocation2 + $0x10] sm:$0xff]  ;;  %v52_v6 = vld [vmem:[#allocation2 + $0x18] sm:$0xff] }
  0x27   :  { %374 = vmatprep.subr.bf16.mxu1 %v457_v0  ;;  %347 = vmatprep.mubr.msk.f32.mxu1 %vm458_vm0, %v459_v1  ;;  %v351_v5 = vpack.c.bf16 %v50_v3, %v49_v2  ;;  %v354_v7 = vpack.c.bf16 %v52_v6, %v51_v4  ;;  %v53_v8 = vld [vmem:[#allocation2 + $0x20] sm:$0xff]  ;;  %v54_v9 = vld [vmem:[#allocation2 + $0x28] sm:$0xff]  ;;  %v145_v12 = vld [vmem:[#allocation4 + $0x10] sm:$0xff] }
  0x28   :  { %v143_v10 = vld [vmem:[#allocation4] sm:$0xff]  ;;  %v144_v11 = vld [vmem:[#allocation4 + $0x8] sm:$0xff]  ;;  %v146_v13 = vld [vmem:[#allocation4 + $0x18] sm:$0xff]  ;;  %v357_v14 = vpack.c.bf16 %v54_v9, %v53_v8 }
  0x29   :  { %352 = vmatpush3.bf16.msra.mxu0 %v351_v5  ;;  %v375_v15 = vpack.c.bf16 %v144_v11, %v143_v10  ;;  %v55_v16 = vld [vmem:[#allocation2 + $0x30] sm:$0xff]  ;;  %v56_v17 = vld [vmem:[#allocation2 + $0x38] sm:$0xff]  ;;  %v378_v18 = vpack.c.bf16 %v146_v13, %v145_v12  ;;  %v147_v19 = vld [vmem:[#allocation4 + $0x20] sm:$0xff] }
  0x2a   :  { %353 = vmatprep.subr.bf16.mxu0 %v457_v0  ;;  %v148_v20 = vld [vmem:[#allocation4 + $0x28] sm:$0xff]  ;;  %v360_v21 = vpack.c.bf16 %v56_v17, %v55_v16  ;;  %v57_v22 = vld [vmem:[#allocation2 + $0x40] sm:$0xff]  ;;  %v149_v25 = vld [vmem:[#allocation4 + $0x30] sm:$0xff] }
  0x2b   :  { %376 = vmatpush3.bf16.msra.mxu1 %v375_v15  ;;  %v58_v23 = vld [vmem:[#allocation2 + $0x48] sm:$0xff]  ;;  %v381_v24 = vpack.c.bf16 %v148_v20, %v147_v19  ;;  %v150_v26 = vld [vmem:[#allocation4 + $0x38] sm:$0xff]  ;;  %v59_v28 = vld [vmem:[#allocation2 + $0x50] sm:$0xff] }
  0x2c   :  { %377 = vmatprep.subr.bf16.mxu1 %v457_v0  ;;  %v363_v27 = vpack.c.bf16 %v58_v23, %v57_v22  ;;  %v60_v29 = vld [vmem:[#allocation2 + $0x58] sm:$0xff]  ;;  %v384_v30 = vpack.c.bf16 %v150_v26, %v149_v25  ;;  %v151_v31 = vld [vmem:[#allocation4 + $0x40] sm:$0xff]  ;;  %v152_v32 = vld [vmem:[#allocation4 + $0x48] sm:$0xff] }
  0x2d   :  { %355 = vmatpush3.bf16.msra.mxu0 %v354_v7  ;;  %v366_v33 = vpack.c.bf16 %v60_v29, %v59_v28  ;;  %v61_v34 = vld [vmem:[#allocation2 + $0x60] sm:$0xff]  ;;  %v62_v35 = vld [vmem:[#allocation2 + $0x68] sm:$0xff]  ;;  %v387_v36 = vpack.c.bf16 %v152_v32, %v151_v31  ;;  %v153_v37 = vld [vmem:[#allocation4 + $0x50] sm:$0xff] }
  0x2e   :  { %356 = vmatprep.subr.bf16.mxu0 %v457_v0  ;;  %v154_v38 = vld [vmem:[#allocation4 + $0x58] sm:$0xff]  ;;  %v369_v39 = vpack.c.bf16 %v62_v35, %v61_v34  ;;  %v63_v40 = vld [vmem:[#allocation2 + $0x70] sm:$0xff]  ;;  %v155_v43 = vld [vmem:[#allocation4 + $0x60] sm:$0xff] }
  0x2f   :  { %379 = vmatpush3.bf16.msra.mxu1 %v378_v18  ;;  %v64_v41 = vld [vmem:[#allocation2 + $0x78] sm:$0xff]  ;;  %v390_v42 = vpack.c.bf16 %v154_v38, %v153_v37  ;;  %v156_v44 = vld [vmem:[#allocation4 + $0x68] sm:$0xff]  ;;  %v48_v47 = vld [vmem:[%s542_s0] sm:$0xff] }
  0x30   :  { %380 = vmatprep.subr.bf16.mxu1 %v457_v0  ;;  %v372_v45 = vpack.c.bf16 %v64_v41, %v63_v40  ;;  %v393_v46 = vpack.c.bf16 %v156_v44, %v155_v43  ;;  %v157_v48 = vld [vmem:[#allocation4 + $0x70] sm:$0xff]  ;;  %v158_v49 = vld [vmem:[#allocation4 + $0x78] sm:$0xff]  ;;  %v244_v51 = vld [vmem:[%s544_s2] ss:$0 sm:$0xff] }
  0x31   :  { %358 = vmatpush3.bf16.msra.mxu0 %v357_v14  ;;  %v396_v50 = vpack.c.bf16 %v158_v49, %v157_v48  ;;  %v245_v56 = vld [vmem:[%s546_s4] ss:$0 sm:$0xff] }
  0x32   :  { %359 = vmatprep.subr.bf16.mxu0 %v457_v0 }
  0x33   :  { %382 = vmatpush3.bf16.msra.mxu1 %v381_v24 }
  0x34   :  { %383 = vmatprep.subr.bf16.mxu1 %v457_v0 }
  0x35   :  { %361 = vmatpush3.bf16.msra.mxu0 %v360_v21 }
  0x36   :  { %362 = vmatprep.subr.bf16.mxu0 %v457_v0 }
  0x37   :  { %385 = vmatpush3.bf16.msra.mxu1 %v384_v30 }
  0x38   :  { %386 = vmatprep.subr.bf16.mxu1 %v457_v0 }
  0x39   :  { %364 = vmatpush3.bf16.msra.mxu0 %v363_v27 }
  0x3a   :  { %365 = vmatprep.subr.bf16.mxu0 %v457_v0 }
  0x3b   :  { %388 = vmatpush3.bf16.msra.mxu1 %v387_v36 }
  0x3c   :  { %389 = vmatprep.subr.bf16.mxu1 %v457_v0 }
  0x3d   :  { %367 = vmatpush3.bf16.msra.mxu0 %v366_v33 }
  0x3e   :  { %368 = vmatprep.subr.bf16.mxu0 %v457_v0 }
  0x3f   :  { %391 = vmatpush3.bf16.msra.mxu1 %v390_v42 }
  0x40   :  { %392 = vmatprep.subr.bf16.mxu1 %v457_v0 }
  0x41   :  { %370 = vmatpush3.bf16.msra.mxu0 %v369_v39 }
  0x42   :  { %371 = vmatprep.subr.bf16.mxu0 %v457_v0 }
  0x43   :  { %394 = vmatpush3.bf16.msra.mxu1 %v393_v46 }
  0x44   :  { %395 = vmatprep.subr.bf16.mxu1 %v457_v0 }
  0x45   :  { %373 = vmatpush3.bf16.msra.mxu0 %v372_v45 }
  0x47   :  { %397 = vmatpush3.bf16.msra.mxu1 %v396_v50 }
  0x48   :  { %313 = vmatmul.mubr.f32.vlgmr.msra.gmra.mrb[0].mxu0 %v48_v47 }
 0x11b   :  { %v138_v52 = vpop.f32.mrb[0].mxu0 }
 0x11c   :  { %v139_v53 = vadd.f32 %v244_v51, %v138_v52  ;;  %v314_v54 = vpop.f32.mrb[1].mxu0 }
 0x11e   :  { %v142_v55 = vmax.f32 %v139_v53, 0.0 }
 0x120   :  { %348 = vmatmul.mubr.f32.vlgmr.msra.gmra.mrb[0].mxu1 %v142_v55 }
 0x1f3   :  { %v232_v57 = vpop.f32.mrb[0].mxu1 }
 0x1f4   :  { %v233_v58 = vadd.f32 %v245_v56, %v232_v57  ;;  %v349_v59 = vpop.f32.mrb[1].mxu1 }
 0x1f6   :  { %v236_v60 = vmax.f32 %v233_v58, 0.0 }
 0x1f8   :  { %237 = vst [vmem:[%s547_s5] sm:$0xff] %v236_v60 }
 0x1f9   :  { %242 = vsyncpa [#allocation3], 1 }
 0x1fa   :  { %243 = vsyncpa [#allocation5], 1 }

</bundles_post_ra>
